<compile_context>
chip_gen: v6e
topology: v6e:2x2x1
jax: 0.10.0
libtpu: 0.0.40
codegen_flags: <defaults>
</compile_context>

<pallas_src>
import jax
import jax.numpy as jnp
from jax import lax
from jax.experimental import pallas as pl
from jax.experimental.pallas import tpu as pltpu

EPS = 1e-5  # nn.InstanceNorm2d default eps (affine=False, track_running_stats=False)

# Operand dtype fed to the MXU. f32 for exact parity with the f32 reference; set to
# jnp.bfloat16 on v6e/v7x (accumulation stays f32) after re-validating tolerances.
MXU_DTYPE = jnp.float32


def _round_up(x, m):
    return (x + m - 1) // m * m


def _pick_vmem_limit_bytes():
    """Generation-aware VMEM scoped limit: ~3/4 of physical (96 MiB v5e/v6e, 48 MiB v7x)."""
    try:
        cap = int(pltpu.get_tpu_info().vmem_capacity_bytes)
    except Exception:
        cap = 64 * 1024 * 1024  # conservative fallback (v7x-sized)
    return min(int(cap * 3 // 4), 112 * 1024 * 1024)


def _make_double_conv_kernel(W, HW, HWp, pad_l, c_in, c_out):
    """Fused (conv3x3 + InstanceNorm2d + ReLU) x2 for one sample, in (C, HW) layout."""
    inv_hw = 1.0 / float(HW)
    pad_r = HWp - pad_l - HW

    def conv_in_relu(tap, w_ref, not_left, not_right):
        # 3x3 conv as 9 accumulating (Cout, Cin) @ (Cin, HW) matmuls; taps are shifted
        # lane slices of the padded, VMEM-resident activation (in-kernel im2col).
        def dx_group(dx):
            acc = None
            for dy in range(3):
                t = dy * 3 + dx
                shift = (dy - 1) * W + (dx - 1)          # flat spatial offset of this tap
                p = jnp.dot(w_ref[t].astype(MXU_DTYPE),
                            tap(pad_l + shift),
                            preferred_element_type=jnp.float32)
                acc = p if acc is None else acc + p
            return acc

        # Masking the output spatial axis commutes with the channel contraction, so mask
        # once per dx-group on the (Cout, HW) partial sums (dx=0 reads column x-1, invalid
        # at x==0; dx=2 reads column x+1, invalid at x==W-1).
        acc = dx_group(1) + dx_group(0) * not_left + dx_group(2) * not_right

        # Conv bias intentionally omitted: a per-channel constant is exactly cancelled by
        # the InstanceNorm2d(affine=False) mean subtraction below.
        mean = jnp.sum(acc, axis=1, keepdims=True) * inv_hw          # (Cout, 1)
        ex2 = jnp.sum(acc * acc, axis=1, keepdims=True) * inv_hw
        var = jnp.maximum(ex2 - mean * mean, 0.0)                    # single-pass, clamped
        y = (acc - mean) * lax.rsqrt(var + EPS)
        return jnp.maximum(y, 0.0)

    def kernel(x_ref, w1_ref, w2_ref, o_ref, xp_ref, y1p_ref):
        # Lane-dense column masks built in-kernel (a few VPU ops; no HBM mask arrays).
        col = jax.lax.broadcasted_iota(jnp.int32, (1, HW), 1) % W
        not_left = (col != 0).astype(jnp.float32)
        not_right = (col != W - 1).astype(jnp.float32)

        # In-kernel zero padding of the activation along the flat spatial (lane) axis.
        # pad_l is a multiple of 128, so every staging store below is lane-aligned.
        # Pads are re-zeroed every grid step: scratch is per-core and uninitialized, and a
        # program_id(0)==0-gated init would be wrong under megacore sharding.
        xp_ref[:, 0:pad_l] = jnp.zeros((c_in, pad_l), MXU_DTYPE)
        xp_ref[:, pad_l:pad_l + HW] = x_ref[0].astype(MXU_DTYPE)
        xp_ref[:, pad_l + HW:HWp] = jnp.zeros((c_in, pad_r), MXU_DTYPE)

        # ---- layer 1 ----
        y1 = conv_in_relu(lambda s: xp_ref[:, s:s + HW], w1_ref, not_left, not_right)

        # ---- stage y1 zero-padded in VMEM for the layer-2 taps (never touches HBM) ----
        y1p_ref[:, 0:pad_l] = jnp.zeros((c_out, pad_l), MXU_DTYPE)
        y1p_ref[:, pad_l:pad_l + HW] = y1.astype(MXU_DTYPE)
        y1p_ref[:, pad_l + HW:HWp] = jnp.zeros((c_out, pad_r), MXU_DTYPE)

        # ---- layer 2 ----
        y2 = conv_in_relu(lambda s: y1p_ref[:, s:s + HW], w2_ref, not_left, not_right)

        # Lane-dense store: (Cout, HW) with HW on the 128-lane axis (unmasked vst).
        o_ref[0] = y2.astype(o_ref.dtype)

    return kernel


def inconv_forward(x_nchw, w1, b1, w2, b2):
    """Forward of inconv(in_ch, out_ch): x (N, Cin, H, W) -> (N, Cout, H, W)."""
    N, Cin, H, W = x_nchw.shape
    Cout = w1.shape[0]
    HW = H * W

    # Conv biases are exactly cancelled by InstanceNorm's mean subtraction; drop them.
    del b1, b2

    # Lane-aligned padding geometry for the flattened spatial axis.
    pad_l = _round_up(W + 1, 128)                       # covers the most-negative tap
    HWp = _round_up(pad_l + HW + pad_l, 128)            # padded flat length (lane multiple)

    # NCHW -> (N, C, H*W) is a pure reshape (no transpose, no copy); cast folds in.
    x_flat = x_nchw.reshape(N, Cin, HW).astype(MXU_DTYPE)

    def fold(w):  # PyTorch (Co, Ci, 3, 3) -> (9, Co, Ci); tap index t = dy*3 + dx
        co, ci = w.shape[0], w.shape[1]
        return jnp.transpose(w, (2, 3, 0, 1)).reshape(9, co, ci).astype(MXU_DTYPE)

    w1_t, w2_t = fold(w1), fold(w2)

    kernel = _make_double_conv_kernel(W, HW, HWp, pad_l, Cin, Cout)

    itemsize = jnp.dtype(MXU_DTYPE).itemsize
    flops = int(2 * N * HW * 9 * (Cin * Cout + Cout * Cout) + 20 * N * HW * Cout)
    bytes_accessed = int(itemsize * (N * HW * Cin + 9 * (Cin * Cout + Cout * Cout))
                         + 4 * N * HW * Cout)

    out = pl.pallas_call(
        kernel,
        out_shape=jax.ShapeDtypeStruct((N, Cout, HW), jnp.float32),
        grid_spec=pltpu.PrefetchScalarGridSpec(
            num_scalar_prefetch=0,
            grid=(N,),
            in_specs=[
                pl.BlockSpec((1, Cin, HW), lambda n: (n, 0, 0)),      # activation (no pad copy)
                pl.BlockSpec((9, Cout, Cin), lambda n: (0, 0, 0)),    # conv1 weight taps
                pl.BlockSpec((9, Cout, Cout), lambda n: (0, 0, 0)),   # conv2 weight taps
            ],
            out_specs=pl.BlockSpec((1, Cout, HW), lambda n: (n, 0, 0)),  # lane-dense output
            scratch_shapes=[
                pltpu.VMEM((Cin, HWp), MXU_DTYPE),    # padded input staging
                pltpu.VMEM((Cout, HWp), MXU_DTYPE),   # padded layer-1 output staging
            ],
        ),
        compiler_params=pltpu.CompilerParams(
            dimension_semantics=("parallel",),        # batch elements across TCs on v7x
            vmem_limit_bytes=_pick_vmem_limit_bytes(),
        ),
        cost_estimate=pl.CostEstimate(
            flops=flops, transcendentals=int(2 * N * Cout), bytes_accessed=bytes_accessed),
    )(x_flat, w1_t, w2_t)

    return out.reshape(N, Cout, H, W)                  # pure reshape — no XLA transpose


def _reference(x, w1, b1, w2, b2):
    """Pure-JAX reference matching the PyTorch module semantics (NCHW, bias included)."""
    def conv(x, w, b):
        y = lax.conv_general_dilated(
            x, w, window_strides=(1, 1), padding="SAME",
            dimension_numbers=("NCHW", "OIHW", "NCHW"))
        return y + b.reshape(1, -1, 1, 1)

    def inorm_relu(y):
        m = jnp.mean(y, axis=(2, 3), keepdims=True)
        v = jnp.mean((y - m) ** 2, axis=(2, 3), keepdims=True)
        return jnp.maximum((y - m) / jnp.sqrt(v + EPS), 0.0)

    y = inorm_relu(conv(x, w1, b1))
    y = inorm_relu(conv(y, w2, b2))
    return y


if __name__ == "__main__":
    N, Cin, Cout, H, W = 2, 4, 8, 16, 16

    key = jax.random.PRNGKey(0)
    k_x, k_w1, k_b1, k_w2, k_b2 = jax.random.split(key, 5)
    x = jax.random.normal(k_x, (N, Cin, H, W), dtype=jnp.float32)
    w1 = 0.1 * jax.random.normal(k_w1, (Cout, Cin, 3, 3), dtype=jnp.float32)
    b1 = 0.1 * jax.random.normal(k_b1, (Cout,), dtype=jnp.float32)
    w2 = 0.1 * jax.random.normal(k_w2, (Cout, Cout, 3, 3), dtype=jnp.float32)
    b2 = 0.1 * jax.random.normal(k_b2, (Cout,), dtype=jnp.float32)

    out = jax.block_until_ready(inconv_forward(x, w1, b1, w2, b2))
    ref = jax.block_until_ready(_reference(x, w1, b1, w2, b2))

    assert out.shape == (N, Cout, H, W), out.shape
    err = float(jnp.max(jnp.abs(out - ref)))
    assert jnp.allclose(out, ref, atol=1e-3, rtol=1e-3), err
    print("KERNEL_OK")
</pallas_src>

<mosaic_0001>
module attributes {stable_mosaic.version = 11 : i64} {
  func.func @kernel(%arg0: i32, %arg1: memref<1x4x256xf32, #tpu.memory_space<vmem>>, %arg2: memref<9x8x4xf32, #tpu.memory_space<vmem>>, %arg3: memref<9x8x8xf32, #tpu.memory_space<vmem>>, %arg4: memref<1x8x256xf32, #tpu.memory_space<vmem>>, %arg5: memref<4x512xf32, #tpu.memory_space<vmem>>, %arg6: memref<8x512xf32, #tpu.memory_space<vmem>>) attributes {dimension_semantics = [#tpu.dimension_semantics<parallel>], iteration_bounds = array<i64: 2>, scalar_prefetch = 0 : i64, scratch_operands = 2 : i64, tpu.core_type = #tpu.core_type<tc>, window_params = [{transform_indices = @transform_0, window_bounds = array<i64: 1, 4, 256>}, {pipeline_mode = #tpu.pipeline_mode<synchronous>, transform_indices = @transform_1, window_bounds = array<i64: 9, 8, 4>}, {pipeline_mode = #tpu.pipeline_mode<synchronous>, transform_indices = @transform_2, window_bounds = array<i64: 9, 8, 8>}, {transform_indices = @transform_3, window_bounds = array<i64: 1, 8, 256>}]} {
    %0 = tpu.iota {dimensions = array<i32: 1>} : vector<1x256xi32>
    %c16_i32 = arith.constant 16 : i32
    %c0_i32 = arith.constant 0 : i32
    %1 = arith.cmpi eq, %c16_i32, %c0_i32 : i32
    %c1_i32 = arith.constant 1 : i32
    %2 = arith.select %1, %c1_i32, %c16_i32 : i32
    %3 = vector.broadcast %2 : i32 to vector<1x256xi32>
    %4 = arith.remsi %0, %3 : vector<1x256xi32>
    %c0_i32_0 = arith.constant 0 : i32
    %5 = vector.broadcast %c0_i32_0 : i32 to vector<1x256xi32>
    %6 = arith.cmpi ne, %4, %5 : vector<1x256xi32>
    %c0_i32_1 = arith.constant 0 : i32
    %7 = vector.broadcast %c0_i32_1 : i32 to vector<1x256xi32>
    %8 = arith.cmpi slt, %4, %7 : vector<1x256xi32>
    %c0_i32_2 = arith.constant 0 : i32
    %9 = arith.cmpi slt, %2, %c0_i32_2 : i32
    %10 = vector.broadcast %9 : i1 to vector<1x256xi1>
    %11 = vector.broadcast %10 : vector<1x256xi1> to vector<1x256xi1>
    %12 = arith.xori %8, %11 : vector<1x256xi1>
    %13 = arith.andi %12, %6 : vector<1x256xi1>
    %14 = vector.broadcast %2 : i32 to vector<1x256xi32>
    %15 = arith.addi %4, %14 : vector<1x256xi32>
    %16 = arith.select %13, %15, %4 : vector<1x256xi1>, vector<1x256xi32>
    %c0_i32_3 = arith.constant 0 : i32
    %17 = vector.broadcast %c0_i32_3 : i32 to vector<1x256xi32>
    %18 = arith.cmpi ne, %16, %17 : vector<1x256xi32>
    %19 = arith.extui %18 : vector<1x256xi1> to vector<1x256xi32>
    %20 = arith.sitofp %19 : vector<1x256xi32> to vector<1x256xf32>
    %c15_i32 = arith.constant 15 : i32
    %21 = vector.broadcast %c15_i32 : i32 to vector<1x256xi32>
    %22 = arith.cmpi ne, %16, %21 : vector<1x256xi32>
    %23 = arith.extui %22 : vector<1x256xi1> to vector<1x256xi32>
    %24 = arith.sitofp %23 : vector<1x256xi32> to vector<1x256xf32>
    %cst = arith.constant 0.000000e+00 : f32
    %25 = vector.broadcast %cst : f32 to vector<4x128xf32>
    %c0 = arith.constant 0 : index
    %c0_4 = arith.constant 0 : index
    %26 = vector.load %arg5[%c0, %c0_4] : memref<4x512xf32, #tpu.memory_space<vmem>>, vector<4x128xf32>
    tpu.vector_store %arg5[%c0, %c0_4], %25 {strides = array<i32>} : memref<4x512xf32, #tpu.memory_space<vmem>>, vector<4x128xf32>,
    %c0_5 = arith.constant 0 : index
    %c0_6 = arith.constant 0 : index
    %c0_7 = arith.constant 0 : index
    %27 = vector.load %arg1[%c0_5, %c0_6, %c0_7] : memref<1x4x256xf32, #tpu.memory_space<vmem>>, vector<1x4x256xf32>
    %28 = vector.shape_cast %27 : vector<1x4x256xf32> to vector<4x256xf32>
    %c0_8 = arith.constant 0 : index
    %c128 = arith.constant 128 : index
    %29 = vector.load %arg5[%c0_8, %c128] : memref<4x512xf32, #tpu.memory_space<vmem>>, vector<4x256xf32>
    tpu.vector_store %arg5[%c0_8, %c128], %28 {strides = array<i32>} : memref<4x512xf32, #tpu.memory_space<vmem>>, vector<4x256xf32>,
    %cst_9 = arith.constant 0.000000e+00 : f32
    %30 = vector.broadcast %cst_9 : f32 to vector<4x128xf32>
    %c0_10 = arith.constant 0 : index
    %c384 = arith.constant 384 : index
    %31 = vector.load %arg5[%c0_10, %c384] : memref<4x512xf32, #tpu.memory_space<vmem>>, vector<4x128xf32>
    tpu.vector_store %arg5[%c0_10, %c384], %30 {strides = array<i32>} : memref<4x512xf32, #tpu.memory_space<vmem>>, vector<4x128xf32>,
    %c1 = arith.constant 1 : index
    %c0_11 = arith.constant 0 : index
    %c0_12 = arith.constant 0 : index
    %32 = vector.load %arg2[%c1, %c0_11, %c0_12] : memref<9x8x4xf32, #tpu.memory_space<vmem>>, vector<1x8x4xf32>
    %33 = vector.shape_cast %32 : vector<1x8x4xf32> to vector<8x4xf32>
    %c0_13 = arith.constant 0 : index
    %c112 = arith.constant 112 : index
    %34 = vector.load %arg5[%c0_13, %c112] : memref<4x512xf32, #tpu.memory_space<vmem>>, vector<4x256xf32>
    %cst_14 = arith.constant dense<0.000000e+00> : vector<8x256xf32>
    %35 = tpu.matmul %33, %34, %cst_14 {dimension_numbers = #tpu.dot_dimension_numbers<[1], [0], [0], [1], [0, 0, 1, 1], [], []>} : vector<8x4xf32>, vector<4x256xf32>, vector<8x256xf32> -> vector<8x256xf32>
    %c4 = arith.constant 4 : index
    %c0_15 = arith.constant 0 : index
    %c0_16 = arith.constant 0 : index
    %36 = vector.load %arg2[%c4, %c0_15, %c0_16] : memref<9x8x4xf32, #tpu.memory_space<vmem>>, vector<1x8x4xf32>
    %37 = vector.shape_cast %36 : vector<1x8x4xf32> to vector<8x4xf32>
    %c0_17 = arith.constant 0 : index
    %c128_18 = arith.constant 128 : index
    %38 = vector.load %arg5[%c0_17, %c128_18] : memref<4x512xf32, #tpu.memory_space<vmem>>, vector<4x256xf32>
    %cst_19 = arith.constant dense<0.000000e+00> : vector<8x256xf32>
    %39 = tpu.matmul %37, %38, %cst_19 {dimension_numbers = #tpu.dot_dimension_numbers<[1], [0], [0], [1], [0, 0, 1, 1], [], []>} : vector<8x4xf32>, vector<4x256xf32>, vector<8x256xf32> -> vector<8x256xf32>
    %40 = arith.addf %35, %39 : vector<8x256xf32>
    %c7 = arith.constant 7 : index
    %c0_20 = arith.constant 0 : index
    %c0_21 = arith.constant 0 : index
    %41 = vector.load %arg2[%c7, %c0_20, %c0_21] : memref<9x8x4xf32, #tpu.memory_space<vmem>>, vector<1x8x4xf32>
    %42 = vector.shape_cast %41 : vector<1x8x4xf32> to vector<8x4xf32>
    %c0_22 = arith.constant 0 : index
    %c144 = arith.constant 144 : index
    %43 = vector.load %arg5[%c0_22, %c144] : memref<4x512xf32, #tpu.memory_space<vmem>>, vector<4x256xf32>
    %cst_23 = arith.constant dense<0.000000e+00> : vector<8x256xf32>
    %44 = tpu.matmul %42, %43, %cst_23 {dimension_numbers = #tpu.dot_dimension_numbers<[1], [0], [0], [1], [0, 0, 1, 1], [], []>} : vector<8x4xf32>, vector<4x256xf32>, vector<8x256xf32> -> vector<8x256xf32>
    %45 = arith.addf %40, %44 : vector<8x256xf32>
    %c0_24 = arith.constant 0 : index
    %c0_25 = arith.constant 0 : index
    %c0_26 = arith.constant 0 : index
    %46 = vector.load %arg2[%c0_24, %c0_25, %c0_26] : memref<9x8x4xf32, #tpu.memory_space<vmem>>, vector<1x8x4xf32>
    %47 = vector.shape_cast %46 : vector<1x8x4xf32> to vector<8x4xf32>
    %c0_27 = arith.constant 0 : index
    %c111 = arith.constant 111 : index
    %48 = vector.load %arg5[%c0_27, %c111] : memref<4x512xf32, #tpu.memory_space<vmem>>, vector<4x256xf32>
    %cst_28 = arith.constant dense<0.000000e+00> : vector<8x256xf32>
    %49 = tpu.matmul %47, %48, %cst_28 {dimension_numbers = #tpu.dot_dimension_numbers<[1], [0], [0], [1], [0, 0, 1, 1], [], []>} : vector<8x4xf32>, vector<4x256xf32>, vector<8x256xf32> -> vector<8x256xf32>
    %c3 = arith.constant 3 : index
    %c0_29 = arith.constant 0 : index
    %c0_30 = arith.constant 0 : index
    %50 = vector.load %arg2[%c3, %c0_29, %c0_30] : memref<9x8x4xf32, #tpu.memory_space<vmem>>, vector<1x8x4xf32>
    %51 = vector.shape_cast %50 : vector<1x8x4xf32> to vector<8x4xf32>
    %c0_31 = arith.constant 0 : index
    %c127 = arith.constant 127 : index
    %52 = vector.load %arg5[%c0_31, %c127] : memref<4x512xf32, #tpu.memory_space<vmem>>, vector<4x256xf32>
    %cst_32 = arith.constant dense<0.000000e+00> : vector<8x256xf32>
    %53 = tpu.matmul %51, %52, %cst_32 {dimension_numbers = #tpu.dot_dimension_numbers<[1], [0], [0], [1], [0, 0, 1, 1], [], []>} : vector<8x4xf32>, vector<4x256xf32>, vector<8x256xf32> -> vector<8x256xf32>
    %54 = arith.addf %49, %53 : vector<8x256xf32>
    %c6 = arith.constant 6 : index
    %c0_33 = arith.constant 0 : index
    %c0_34 = arith.constant 0 : index
    %55 = vector.load %arg2[%c6, %c0_33, %c0_34] : memref<9x8x4xf32, #tpu.memory_space<vmem>>, vector<1x8x4xf32>
    %56 = vector.shape_cast %55 : vector<1x8x4xf32> to vector<8x4xf32>
    %c0_35 = arith.constant 0 : index
    %c143 = arith.constant 143 : index
    %57 = vector.load %arg5[%c0_35, %c143] : memref<4x512xf32, #tpu.memory_space<vmem>>, vector<4x256xf32>
    %cst_36 = arith.constant dense<0.000000e+00> : vector<8x256xf32>
    %58 = tpu.matmul %56, %57, %cst_36 {dimension_numbers = #tpu.dot_dimension_numbers<[1], [0], [0], [1], [0, 0, 1, 1], [], []>} : vector<8x4xf32>, vector<4x256xf32>, vector<8x256xf32> -> vector<8x256xf32>
    %59 = arith.addf %54, %58 : vector<8x256xf32>
    %60 = vector.broadcast %20 : vector<1x256xf32> to vector<8x256xf32>
    %61 = arith.mulf %59, %60 : vector<8x256xf32>
    %62 = arith.addf %45, %61 : vector<8x256xf32>
    %c2 = arith.constant 2 : index
    %c0_37 = arith.constant 0 : index
    %c0_38 = arith.constant 0 : index
    %63 = vector.load %arg2[%c2, %c0_37, %c0_38] : memref<9x8x4xf32, #tpu.memory_space<vmem>>, vector<1x8x4xf32>
    %64 = vector.shape_cast %63 : vector<1x8x4xf32> to vector<8x4xf32>
    %c0_39 = arith.constant 0 : index
    %c113 = arith.constant 113 : index
    %65 = vector.load %arg5[%c0_39, %c113] : memref<4x512xf32, #tpu.memory_space<vmem>>, vector<4x256xf32>
    %cst_40 = arith.constant dense<0.000000e+00> : vector<8x256xf32>
    %66 = tpu.matmul %64, %65, %cst_40 {dimension_numbers = #tpu.dot_dimension_numbers<[1], [0], [0], [1], [0, 0, 1, 1], [], []>} : vector<8x4xf32>, vector<4x256xf32>, vector<8x256xf32> -> vector<8x256xf32>
    %c5 = arith.constant 5 : index
    %c0_41 = arith.constant 0 : index
    %c0_42 = arith.constant 0 : index
    %67 = vector.load %arg2[%c5, %c0_41, %c0_42] : memref<9x8x4xf32, #tpu.memory_space<vmem>>, vector<1x8x4xf32>
    %68 = vector.shape_cast %67 : vector<1x8x4xf32> to vector<8x4xf32>
    %c0_43 = arith.constant 0 : index
    %c129 = arith.constant 129 : index
    %69 = vector.load %arg5[%c0_43, %c129] : memref<4x512xf32, #tpu.memory_space<vmem>>, vector<4x256xf32>
    %cst_44 = arith.constant dense<0.000000e+00> : vector<8x256xf32>
    %70 = tpu.matmul %68, %69, %cst_44 {dimension_numbers = #tpu.dot_dimension_numbers<[1], [0], [0], [1], [0, 0, 1, 1], [], []>} : vector<8x4xf32>, vector<4x256xf32>, vector<8x256xf32> -> vector<8x256xf32>
    %71 = arith.addf %66, %70 : vector<8x256xf32>
    %c8 = arith.constant 8 : index
    %c0_45 = arith.constant 0 : index
    %c0_46 = arith.constant 0 : index
    %72 = vector.load %arg2[%c8, %c0_45, %c0_46] : memref<9x8x4xf32, #tpu.memory_space<vmem>>, vector<1x8x4xf32>
    %73 = vector.shape_cast %72 : vector<1x8x4xf32> to vector<8x4xf32>
    %c0_47 = arith.constant 0 : index
    %c145 = arith.constant 145 : index
    %74 = vector.load %arg5[%c0_47, %c145] : memref<4x512xf32, #tpu.memory_space<vmem>>, vector<4x256xf32>
    %cst_48 = arith.constant dense<0.000000e+00> : vector<8x256xf32>
    %75 = tpu.matmul %73, %74, %cst_48 {dimension_numbers = #tpu.dot_dimension_numbers<[1], [0], [0], [1], [0, 0, 1, 1], [], []>} : vector<8x4xf32>, vector<4x256xf32>, vector<8x256xf32> -> vector<8x256xf32>
    %76 = arith.addf %71, %75 : vector<8x256xf32>
    %77 = vector.broadcast %24 : vector<1x256xf32> to vector<8x256xf32>
    %78 = arith.mulf %76, %77 : vector<8x256xf32>
    %79 = arith.addf %62, %78 : vector<8x256xf32>
    %cst_49 = arith.constant dense<0.000000e+00> : vector<8xf32>
    %80 = vector.multi_reduction <add>, %79, %cst_49 [1] : vector<8x256xf32> to vector<8xf32>
    %81 = vector.shape_cast %80 : vector<8xf32> to vector<8x1xf32>
    %cst_50 = arith.constant 3.906250e-03 : f32
    %82 = vector.broadcast %cst_50 : f32 to vector<8x1xf32>
    %83 = arith.mulf %81, %82 : vector<8x1xf32>
    %84 = arith.mulf %79, %79 : vector<8x256xf32>
    %cst_51 = arith.constant dense<0.000000e+00> : vector<8xf32>
    %85 = vector.multi_reduction <add>, %84, %cst_51 [1] : vector<8x256xf32> to vector<8xf32>
    %86 = vector.shape_cast %85 : vector<8xf32> to vector<8x1xf32>
    %cst_52 = arith.constant 3.906250e-03 : f32
    %87 = vector.broadcast %cst_52 : f32 to vector<8x1xf32>
    %88 = arith.mulf %86, %87 : vector<8x1xf32>
    %89 = arith.mulf %83, %83 : vector<8x1xf32>
    %90 = arith.subf %88, %89 : vector<8x1xf32>
    %cst_53 = arith.constant 0.000000e+00 : f32
    %91 = vector.broadcast %cst_53 : f32 to vector<8x1xf32>
    %92 = arith.maximumf %90, %91 : vector<8x1xf32>
    %93 = vector.broadcast %83 : vector<8x1xf32> to vector<8x256xf32>
    %94 = arith.subf %79, %93 : vector<8x256xf32>
    %cst_54 = arith.constant 9.99999974E-6 : f32
    %95 = vector.broadcast %cst_54 : f32 to vector<8x1xf32>
    %96 = arith.addf %92, %95 : vector<8x1xf32>
    %97 = math.rsqrt %96 : vector<8x1xf32>
    %98 = vector.broadcast %97 : vector<8x1xf32> to vector<8x256xf32>
    %99 = arith.mulf %94, %98 : vector<8x256xf32>
    %cst_55 = arith.constant 0.000000e+00 : f32
    %100 = vector.broadcast %cst_55 : f32 to vector<8x256xf32>
    %101 = arith.maximumf %99, %100 : vector<8x256xf32>
    %cst_56 = arith.constant 0.000000e+00 : f32
    %102 = vector.broadcast %cst_56 : f32 to vector<8x128xf32>
    %c0_57 = arith.constant 0 : index
    %c0_58 = arith.constant 0 : index
    %103 = vector.load %arg6[%c0_57, %c0_58] : memref<8x512xf32, #tpu.memory_space<vmem>>, vector<8x128xf32>
    tpu.vector_store %arg6[%c0_57, %c0_58], %102 {strides = array<i32>} : memref<8x512xf32, #tpu.memory_space<vmem>>, vector<8x128xf32>,
    %c0_59 = arith.constant 0 : index
    %c128_60 = arith.constant 128 : index
    %104 = vector.load %arg6[%c0_59, %c128_60] : memref<8x512xf32, #tpu.memory_space<vmem>>, vector<8x256xf32>
    tpu.vector_store %arg6[%c0_59, %c128_60], %101 {strides = array<i32>} : memref<8x512xf32, #tpu.memory_space<vmem>>, vector<8x256xf32>,
    %cst_61 = arith.constant 0.000000e+00 : f32
    %105 = vector.broadcast %cst_61 : f32 to vector<8x128xf32>
    %c0_62 = arith.constant 0 : index
    %c384_63 = arith.constant 384 : index
    %106 = vector.load %arg6[%c0_62, %c384_63] : memref<8x512xf32, #tpu.memory_space<vmem>>, vector<8x128xf32>
    tpu.vector_store %arg6[%c0_62, %c384_63], %105 {strides = array<i32>} : memref<8x512xf32, #tpu.memory_space<vmem>>, vector<8x128xf32>,
    %c1_64 = arith.constant 1 : index
    %c0_65 = arith.constant 0 : index
    %c0_66 = arith.constant 0 : index
    %107 = vector.load %arg3[%c1_64, %c0_65, %c0_66] : memref<9x8x8xf32, #tpu.memory_space<vmem>>, vector<1x8x8xf32>
    %108 = vector.shape_cast %107 : vector<1x8x8xf32> to vector<8x8xf32>
    %c0_67 = arith.constant 0 : index
    %c112_68 = arith.constant 112 : index
    %109 = vector.load %arg6[%c0_67, %c112_68] : memref<8x512xf32, #tpu.memory_space<vmem>>, vector<8x256xf32>
    %cst_69 = arith.constant dense<0.000000e+00> : vector<8x256xf32>
    %110 = tpu.matmul %108, %109, %cst_69 {dimension_numbers = #tpu.dot_dimension_numbers<[1], [0], [0], [1], [0, 0, 1, 1], [], []>} : vector<8x8xf32>, vector<8x256xf32>, vector<8x256xf32> -> vector<8x256xf32>
    %c4_70 = arith.constant 4 : index
    %c0_71 = arith.constant 0 : index
    %c0_72 = arith.constant 0 : index
    %111 = vector.load %arg3[%c4_70, %c0_71, %c0_72] : memref<9x8x8xf32, #tpu.memory_space<vmem>>, vector<1x8x8xf32>
    %112 = vector.shape_cast %111 : vector<1x8x8xf32> to vector<8x8xf32>
    %c0_73 = arith.constant 0 : index
    %c128_74 = arith.constant 128 : index
    %113 = vector.load %arg6[%c0_73, %c128_74] : memref<8x512xf32, #tpu.memory_space<vmem>>, vector<8x256xf32>
    %cst_75 = arith.constant dense<0.000000e+00> : vector<8x256xf32>
    %114 = tpu.matmul %112, %113, %cst_75 {dimension_numbers = #tpu.dot_dimension_numbers<[1], [0], [0], [1], [0, 0, 1, 1], [], []>} : vector<8x8xf32>, vector<8x256xf32>, vector<8x256xf32> -> vector<8x256xf32>
    %115 = arith.addf %110, %114 : vector<8x256xf32>
    %c7_76 = arith.constant 7 : index
    %c0_77 = arith.constant 0 : index
    %c0_78 = arith.constant 0 : index
    %116 = vector.load %arg3[%c7_76, %c0_77, %c0_78] : memref<9x8x8xf32, #tpu.memory_space<vmem>>, vector<1x8x8xf32>
    %117 = vector.shape_cast %116 : vector<1x8x8xf32> to vector<8x8xf32>
    %c0_79 = arith.constant 0 : index
    %c144_80 = arith.constant 144 : index
    %118 = vector.load %arg6[%c0_79, %c144_80] : memref<8x512xf32, #tpu.memory_space<vmem>>, vector<8x256xf32>
    %cst_81 = arith.constant dense<0.000000e+00> : vector<8x256xf32>
    %119 = tpu.matmul %117, %118, %cst_81 {dimension_numbers = #tpu.dot_dimension_numbers<[1], [0], [0], [1], [0, 0, 1, 1], [], []>} : vector<8x8xf32>, vector<8x256xf32>, vector<8x256xf32> -> vector<8x256xf32>
    %120 = arith.addf %115, %119 : vector<8x256xf32>
    %c0_82 = arith.constant 0 : index
    %c0_83 = arith.constant 0 : index
    %c0_84 = arith.constant 0 : index
    %121 = vector.load %arg3[%c0_82, %c0_83, %c0_84] : memref<9x8x8xf32, #tpu.memory_space<vmem>>, vector<1x8x8xf32>
    %122 = vector.shape_cast %121 : vector<1x8x8xf32> to vector<8x8xf32>
    %c0_85 = arith.constant 0 : index
    %c111_86 = arith.constant 111 : index
    %123 = vector.load %arg6[%c0_85, %c111_86] : memref<8x512xf32, #tpu.memory_space<vmem>>, vector<8x256xf32>
    %cst_87 = arith.constant dense<0.000000e+00> : vector<8x256xf32>
    %124 = tpu.matmul %122, %123, %cst_87 {dimension_numbers = #tpu.dot_dimension_numbers<[1], [0], [0], [1], [0, 0, 1, 1], [], []>} : vector<8x8xf32>, vector<8x256xf32>, vector<8x256xf32> -> vector<8x256xf32>
    %c3_88 = arith.constant 3 : index
    %c0_89 = arith.constant 0 : index
    %c0_90 = arith.constant 0 : index
    %125 = vector.load %arg3[%c3_88, %c0_89, %c0_90] : memref<9x8x8xf32, #tpu.memory_space<vmem>>, vector<1x8x8xf32>
    %126 = vector.shape_cast %125 : vector<1x8x8xf32> to vector<8x8xf32>
    %c0_91 = arith.constant 0 : index
    %c127_92 = arith.constant 127 : index
    %127 = vector.load %arg6[%c0_91, %c127_92] : memref<8x512xf32, #tpu.memory_space<vmem>>, vector<8x256xf32>
    %cst_93 = arith.constant dense<0.000000e+00> : vector<8x256xf32>
    %128 = tpu.matmul %126, %127, %cst_93 {dimension_numbers = #tpu.dot_dimension_numbers<[1], [0], [0], [1], [0, 0, 1, 1], [], []>} : vector<8x8xf32>, vector<8x256xf32>, vector<8x256xf32> -> vector<8x256xf32>
    %129 = arith.addf %124, %128 : vector<8x256xf32>
    %c6_94 = arith.constant 6 : index
    %c0_95 = arith.constant 0 : index
    %c0_96 = arith.constant 0 : index
    %130 = vector.load %arg3[%c6_94, %c0_95, %c0_96] : memref<9x8x8xf32, #tpu.memory_space<vmem>>, vector<1x8x8xf32>
    %131 = vector.shape_cast %130 : vector<1x8x8xf32> to vector<8x8xf32>
    %c0_97 = arith.constant 0 : index
    %c143_98 = arith.constant 143 : index
    %132 = vector.load %arg6[%c0_97, %c143_98] : memref<8x512xf32, #tpu.memory_space<vmem>>, vector<8x256xf32>
    %cst_99 = arith.constant dense<0.000000e+00> : vector<8x256xf32>
    %133 = tpu.matmul %131, %132, %cst_99 {dimension_numbers = #tpu.dot_dimension_numbers<[1], [0], [0], [1], [0, 0, 1, 1], [], []>} : vector<8x8xf32>, vector<8x256xf32>, vector<8x256xf32> -> vector<8x256xf32>
    %134 = arith.addf %129, %133 : vector<8x256xf32>
    %135 = vector.broadcast %20 : vector<1x256xf32> to vector<8x256xf32>
    %136 = arith.mulf %134, %135 : vector<8x256xf32>
    %137 = arith.addf %120, %136 : vector<8x256xf32>
    %c2_100 = arith.constant 2 : index
    %c0_101 = arith.constant 0 : index
    %c0_102 = arith.constant 0 : index
    %138 = vector.load %arg3[%c2_100, %c0_101, %c0_102] : memref<9x8x8xf32, #tpu.memory_space<vmem>>, vector<1x8x8xf32>
    %139 = vector.shape_cast %138 : vector<1x8x8xf32> to vector<8x8xf32>
    %c0_103 = arith.constant 0 : index
    %c113_104 = arith.constant 113 : index
    %140 = vector.load %arg6[%c0_103, %c113_104] : memref<8x512xf32, #tpu.memory_space<vmem>>, vector<8x256xf32>
    %cst_105 = arith.constant dense<0.000000e+00> : vector<8x256xf32>
    %141 = tpu.matmul %139, %140, %cst_105 {dimension_numbers = #tpu.dot_dimension_numbers<[1], [0], [0], [1], [0, 0, 1, 1], [], []>} : vector<8x8xf32>, vector<8x256xf32>, vector<8x256xf32> -> vector<8x256xf32>
    %c5_106 = arith.constant 5 : index
    %c0_107 = arith.constant 0 : index
    %c0_108 = arith.constant 0 : index
    %142 = vector.load %arg3[%c5_106, %c0_107, %c0_108] : memref<9x8x8xf32, #tpu.memory_space<vmem>>, vector<1x8x8xf32>
    %143 = vector.shape_cast %142 : vector<1x8x8xf32> to vector<8x8xf32>
    %c0_109 = arith.constant 0 : index
    %c129_110 = arith.constant 129 : index
    %144 = vector.load %arg6[%c0_109, %c129_110] : memref<8x512xf32, #tpu.memory_space<vmem>>, vector<8x256xf32>
    %cst_111 = arith.constant dense<0.000000e+00> : vector<8x256xf32>
    %145 = tpu.matmul %143, %144, %cst_111 {dimension_numbers = #tpu.dot_dimension_numbers<[1], [0], [0], [1], [0, 0, 1, 1], [], []>} : vector<8x8xf32>, vector<8x256xf32>, vector<8x256xf32> -> vector<8x256xf32>
    %146 = arith.addf %141, %145 : vector<8x256xf32>
    %c8_112 = arith.constant 8 : index
    %c0_113 = arith.constant 0 : index
    %c0_114 = arith.constant 0 : index
    %147 = vector.load %arg3[%c8_112, %c0_113, %c0_114] : memref<9x8x8xf32, #tpu.memory_space<vmem>>, vector<1x8x8xf32>
    %148 = vector.shape_cast %147 : vector<1x8x8xf32> to vector<8x8xf32>
    %c0_115 = arith.constant 0 : index
    %c145_116 = arith.constant 145 : index
    %149 = vector.load %arg6[%c0_115, %c145_116] : memref<8x512xf32, #tpu.memory_space<vmem>>, vector<8x256xf32>
    %cst_117 = arith.constant dense<0.000000e+00> : vector<8x256xf32>
    %150 = tpu.matmul %148, %149, %cst_117 {dimension_numbers = #tpu.dot_dimension_numbers<[1], [0], [0], [1], [0, 0, 1, 1], [], []>} : vector<8x8xf32>, vector<8x256xf32>, vector<8x256xf32> -> vector<8x256xf32>
    %151 = arith.addf %146, %150 : vector<8x256xf32>
    %152 = vector.broadcast %24 : vector<1x256xf32> to vector<8x256xf32>
    %153 = arith.mulf %151, %152 : vector<8x256xf32>
    %154 = arith.addf %137, %153 : vector<8x256xf32>
    %cst_118 = arith.constant dense<0.000000e+00> : vector<8xf32>
    %155 = vector.multi_reduction <add>, %154, %cst_118 [1] : vector<8x256xf32> to vector<8xf32>
    %156 = vector.shape_cast %155 : vector<8xf32> to vector<8x1xf32>
    %cst_119 = arith.constant 3.906250e-03 : f32
    %157 = vector.broadcast %cst_119 : f32 to vector<8x1xf32>
    %158 = arith.mulf %156, %157 : vector<8x1xf32>
    %159 = arith.mulf %154, %154 : vector<8x256xf32>
    %cst_120 = arith.constant dense<0.000000e+00> : vector<8xf32>
    %160 = vector.multi_reduction <add>, %159, %cst_120 [1] : vector<8x256xf32> to vector<8xf32>
    %161 = vector.shape_cast %160 : vector<8xf32> to vector<8x1xf32>
    %cst_121 = arith.constant 3.906250e-03 : f32
    %162 = vector.broadcast %cst_121 : f32 to vector<8x1xf32>
    %163 = arith.mulf %161, %162 : vector<8x1xf32>
    %164 = arith.mulf %158, %158 : vector<8x1xf32>
    %165 = arith.subf %163, %164 : vector<8x1xf32>
    %cst_122 = arith.constant 0.000000e+00 : f32
    %166 = vector.broadcast %cst_122 : f32 to vector<8x1xf32>
    %167 = arith.maximumf %165, %166 : vector<8x1xf32>
    %168 = vector.broadcast %158 : vector<8x1xf32> to vector<8x256xf32>
    %169 = arith.subf %154, %168 : vector<8x256xf32>
    %cst_123 = arith.constant 9.99999974E-6 : f32
    %170 = vector.broadcast %cst_123 : f32 to vector<8x1xf32>
    %171 = arith.addf %167, %170 : vector<8x1xf32>
    %172 = math.rsqrt %171 : vector<8x1xf32>
    %173 = vector.broadcast %172 : vector<8x1xf32> to vector<8x256xf32>
    %174 = arith.mulf %169, %173 : vector<8x256xf32>
    %cst_124 = arith.constant 0.000000e+00 : f32
    %175 = vector.broadcast %cst_124 : f32 to vector<8x256xf32>
    %176 = arith.maximumf %174, %175 : vector<8x256xf32>
    %c0_125 = arith.constant 0 : index
    %c0_126 = arith.constant 0 : index
    %c0_127 = arith.constant 0 : index
    %177 = vector.load %arg4[%c0_125, %c0_126, %c0_127] : memref<1x8x256xf32, #tpu.memory_space<vmem>>, vector<1x8x256xf32>
    %178 = vector.shape_cast %177 : vector<1x8x256xf32> to vector<8x256xf32>
    %179 = vector.shape_cast %176 : vector<8x256xf32> to vector<1x8x256xf32>
    tpu.vector_store %arg4[%c0_125, %c0_126, %c0_127], %179 {strides = array<i32>} : memref<1x8x256xf32, #tpu.memory_space<vmem>>, vector<1x8x256xf32>,
    return
  }
  func.func @transform_0(%arg0: i32) -> (i32, i32, i32) {
    %c0_i32 = arith.constant 0 : i32
    %c0_i32_0 = arith.constant 0 : i32
    %c0_i32_1 = arith.constant 0 : i32
    return %arg0, %c0_i32, %c0_i32_0 : i32, i32, i32
  }
  func.func @transform_1(%arg0: i32) -> (i32, i32, i32) {
    %c0_i32 = arith.constant 0 : i32
    %c0_i32_0 = arith.constant 0 : i32
    %c0_i32_1 = arith.constant 0 : i32
    %c0_i32_2 = arith.constant 0 : i32
    return %c0_i32, %c0_i32_0, %c0_i32_1 : i32, i32, i32
  }
  func.func @transform_2(%arg0: i32) -> (i32, i32, i32) {
    %c0_i32 = arith.constant 0 : i32
    %c0_i32_0 = arith.constant 0 : i32
    %c0_i32_1 = arith.constant 0 : i32
    %c0_i32_2 = arith.constant 0 : i32
    return %c0_i32, %c0_i32_0, %c0_i32_1 : i32, i32, i32
  }
  func.func @transform_3(%arg0: i32) -> (i32, i32, i32) {
    %c0_i32 = arith.constant 0 : i32
    %c0_i32_0 = arith.constant 0 : i32
    %c0_i32_1 = arith.constant 0 : i32
    return %arg0, %c0_i32, %c0_i32_0 : i32, i32, i32
  }
}

</mosaic_0001>

<bundles_post_ra>
// kernel: tpu_custom_call.1
= control target key start
LH: loop header
LB: loop body
LE: loop exit
PB: predicated region body
PF: predicated region fallthrough
CT: control target
= control target key end

     0   :  { %8 = vsyncpa [#allocation5], 0  ;;  %s2496_s0 = inlined_call_operand.vmem [shape: f32[2,4,256], index: 0, kind: input, shape index: {}]   ;;  %s2497_s1 = inlined_call_operand.vmem [shape: f32[9,8,4], index: 1, kind: input, shape index: {}]   ;;  %s2498_s2 = inlined_call_operand.vmem [shape: f32[9,8,8], index: 2, kind: input, shape index: {}]   ;;  %s2499_s3 = inlined_call_operand.hbm [shape: f32[2,8,256], index: 3, kind: output, shape index: {}]  }
   0x1   :  { %10 = vsyncpa [#allocation5 + $0x1], 0  ;;  %s2185_s12 = smov 0   ;;  %s2187_s13 = smov 0  }
   0x2   :  { %s2189_s14 = smov 0   ;;  %s2191_s15 = smov 0  }
   0x3 LB: > { %s2206_s16 = sadd.s32 4294967295, %s2153_s15   ;;  %s1969_s17 = sadd.s32 4294967294, %s2153_s15   ;;  %s2153_s15 = sphi %s2191_s15, %s2505_s15   ;;  %s2149_s14 = sphi %s2189_s14, %s2504_s14   ;;  %s2145_s13 = sphi %s2187_s13, %s2503_s13   ;;  %s2141_s12 = sphi %s2185_s12, %s2502_s12  }
   0x4   : > { %s2210_s18 = sadd.s32 1, %s2153_s15   ;;  %s91_s19 = sadd.s32 1, %s2149_s14 }
   0x5   : > { %s88_s20 = ssub.s32 %s2153_s15, %s2210_s18  ;;  %p101_p0 = scmp.ne.s32.totalorder %s2149_s14, %s2145_s13 }
   0x6   : > { %p89_p1 = scmp.eq.s32.totalorder %s88_s20, 0  ;;  %p102_p2 = scmp.eq.s32.totalorder %s2206_s16, 1 }
   0x7   : > { %p107_p3 = scmp.ne.s32.totalorder %s2145_s13, %s2141_s12  ;;  %p108_p4 = scmp.eq.s32.totalorder %s1969_s17, 1 }
   0x8   : > { %s2221_s21 = scalar_select %p89_p1, %s2149_s14, %s91_s19  }
   0x9   : > { %p2223_p5 = por %p102_p2, %p101_p0  ;;  %p2227_p6 = por %p108_p4, %p107_p3 }
   0xa   : > { %p1972_p7 = scmp.ge.s32.totalorder %s2153_s15, 1  ;;  %p140_p8 = scmp.lt.s32.totalorder %s2153_s15, 3 }
   0xc   : > { %p141_p9 = pnand %p1972_p7, %p140_p8 }
   0xd   : > { %p164_p10 = scmp.lt.s32.totalorder (!%p141_p9), %s2206_s16, 1  ;;  %s2156_s29 = smov (!%p141_p9), 112  }
   0xe   : > { %144 = sbr.rel (%p141_p9) target bundleno = 1097 (0x449), region = 32  ;;  %s2157_s30 = smov (!%p141_p9), 16  }
   0xf   : > { %s2158_s6 = smov (!%p141_p9), 1   ;;  %s2159_s7 = smov (!%p141_p9), 17  }
  0x10   : > { %s2160_s8 = smov (!%p141_p9), 113   ;;  %s2161_s9 = smov (!%p141_p9), 127  }
  0x11   : > { %s2162_s10 = smov (!%p141_p9), 15   ;;  %s2163_s11 = smov (!%p141_p9), 111  }
  0x12   : > { %s161_s27 = sand.u32 (!%p141_p9), 1, %s2145_s13  }
  0x13   : > { %v2155_v0 = vmov 0.0   ;;  %s165_s24 = scalar_select %p164_p10, %s2206_s16, 1  ;;  %vm225_vm0 = vcmask 1043456   ;;  %v1981_v6 = vld [vmem:[%s2497_s1 + $0x20] sm:$0xff]  ;;  %vm221_vm1 = vcmask 31744   ;;  %vm310_vm2 = vcmask 130048  }
  0x14   : > { %211 = vst [vmem:[#allocation2 + $0xc] sm:$0xf] %v2155_v0  ;;  %208 = vst [vmem:[#allocation2] sm:$0xf] %v2155_v0  ;;  %294 = vmatprep.mubr.f32.mxu0 %v2155_v0  ;;  %384 = vmatprep.mubr.f32.mxu1 %v2155_v0  ;;  %v1980_v22 = vld [vmem:[%s2497_s1 + $0x8] sm:$0xff]  ;;  %vm404_vm3 = vcmask 916480  }
  0x15   : > { %s2037_s25 = sshll.u32 %s165_s24, 3  ;;  %vm501_vm4 = vcmask 7168   ;;  %v1988_v29 = vld [vmem:[%s2497_s1 + $0x38] sm:$0xff]  ;;  %vm588_vm5 = vcmask 138240   ;;  %v487_v36 = vld [vmem:[%s2497_s1] sm:$0xff]  ;;  %vm682_vm6 = vcmask 924672  }
  0x16   : > { %s168_s28 = scalar_lea.vmem %s2496_s0, %s2037_s25  ;;  %v1992_v30 = vld [vmem:[%s2497_s1 + $0x18] sm:$0xff]  ;;  %v1999_v42 = vld [vmem:[%s2497_s1 + $0x30] sm:$0xff]  ;;  %vm786_vm7 = vcmask 1039360   ;;  %v2004_v48 = vld [vmem:[%s2497_s1 + $0x28] sm:$0xff]  ;;  %vm876_vm8 = vcmask 121856   ;;  %vm970_vm9 = vcmask 908288  }
  0x17   : > { %v209_v1 = vld [vmem:[%s168_s28] sm:$0xff]  ;;  %v2003_v54 = vld [vmem:[%s2497_s1 + $0x10] sm:$0xff]  ;;  %vm1089_vm14 = vcmask 64512   ;;  %s1973_s28 = sshll.u32 %s161_s27, 4 }
  0x18   : > { %210 = vst [vmem:[#allocation2 + $0x4] sm:$0xff] %v209_v1  ;;  %v397_v3 = vcombine.high %v209_v1, %v209_v1  ;;  %v2011_v59 = vld [vmem:[%s2497_s1 + $0x40] sm:$0xff] }
  0x1a   : > { %1982 = vmatprep.subr.msk.mxu0 %vm225_vm0, %v397_v3 }
  0x1b   : > { %v394_v2 = vld [vmem:[#allocation2 + $0xc] sm:$0xf]  ;;  %1983 = vmatpush1.msk.msra.mxu0 %vm225_vm0, %v209_v1 }
  0x1c   : > { %402 = vrot.lane.b32.xlu0 %v394_v2, %s2156_s29  ;;  %1984 = vmatmul.mubr.msk.f32.vlgmr.msra.gmra.mxu0 %vm221_vm1, %v1981_v6  ;;  %v672_v9 = vld [vmem:[#allocation2 + $0xc] sm:$0xf] }
  0x1d   : > { %478 = vmatprep.mubr.f32.mxu0 %v2155_v0  ;;  %v776_v10 = vld [vmem:[#allocation2 + $0xc] sm:$0xf] }
  0x1e   : > { %v960_v12 = vld [vmem:[#allocation2 + $0xc] sm:$0xf] }
  0x1f   : > { %v215_v4 = vld [vmem:[#allocation2 + $0x8] sm:$0xf]  ;;  %v214_v5 = vld [vmem:[#allocation2] sm:$0xff] }
  0x20   : > { %308 = vrot.lane.b32.xlu0 %v215_v4, %s2157_s30  ;;  %304 = vrot.lane.b32.xlu1 %v214_v5, %s2157_s30  ;;  %v303_v7 = vcombine.high %v214_v5, %v214_v5  ;;  %v489_v8 = vld [vmem:[#allocation2 + $0x8] sm:$0xf] }
  0x21   : > { %v772_v11 = vld [vmem:[#allocation2 + $0x8] sm:$0xf] }
  0x24   : > { %495 = vrot.lane.b32.xlu0 %v214_v5, %s2158_s6  ;;  %398 = vrot.lane.b32.xlu1 %v209_v1, %s2156_s29 }
  0x28   : > { %499 = vrot.lane.b32.xlu1 %v489_v8, %s2158_s6  ;;  %306 = vrot.lane.b32.xlu0 %v303_v7, %s2157_s30 }
  0x2c   : > { %400 = vrot.lane.b32.xlu1 %v397_v3, %s2156_s29  ;;  %497 = vrot.lane.b32.xlu0 %v303_v7, %s2158_s6 }
  0x30   : > { %584 = vrot.lane.b32.xlu1 %v303_v7, %s2159_s7  ;;  %586 = vrot.lane.b32.xlu0 %v489_v8, %s2159_s7 }
  0x34   : > { %582 = vrot.lane.b32.xlu1 %v214_v5, %s2159_s7  ;;  %678 = vrot.lane.b32.xlu0 %v397_v3, %s2160_s8 }
  0x38   : > { %680 = vrot.lane.b32.xlu1 %v672_v9, %s2160_s8  ;;  %676 = vrot.lane.b32.xlu0 %v209_v1, %s2160_s8 }
  0x3c   : > { %782 = vrot.lane.b32.xlu1 %v397_v3, %s2161_s9  ;;  %784 = vrot.lane.b32.xlu0 %v776_v10, %s2161_s9 }
  0x40   : > { %780 = vrot.lane.b32.xlu1 %v209_v1, %s2161_s9  ;;  %872 = vrot.lane.b32.xlu0 %v303_v7, %s2162_s10 }
  0x44   : > { %874 = vrot.lane.b32.xlu1 %v772_v11, %s2162_s10  ;;  %870 = vrot.lane.b32.xlu0 %v214_v5, %s2162_s10 }
  0x48   : > { %966 = vrot.lane.b32.xlu1 %v397_v3, %s2163_s11  ;;  %968 = vrot.lane.b32.xlu0 %v960_v12, %s2163_s11  ;;  %v169_v3 = vlaneseq }
  0x4a   : > { %v170_v6 = vand.u32 127, %v169_v3 }
  0x4c   : > { %964 = vrot.lane.b32.xlu1 %v209_v1, %s2163_s11  ;;  %v171_v9 = vadd.s32 128, %v170_v6  ;;  %v176_v11 = vand.u32 15, %v170_v6 }
  0x4e   : > { %vm196_vm10 = vcmp.ne.s32.totalorder %v176_v11, 0  ;;  %vm202_vm12 = vcmp.ne.s32.totalorder %v176_v11, 15 }
  0x8e   : > { %v403_v13 = vpop.permute.xlu0 %402 }
  0x92   : > { %v309_v14 = vpop.permute.xlu0 %308  ;;  %v305_v15 = vpop.permute.xlu1 %304 }
  0x96   : > { %v496_v16 = vpop.permute.xlu0 %495  ;;  %v399_v17 = vpop.permute.xlu1 %398 }
  0x9a   : > { %v500_v18 = vpop.permute.xlu1 %499  ;;  %v307_v19 = vpop.permute.xlu0 %306 }
  0x9b   : > { %v312_v20 = vsel %vm310_vm2, %v307_v19, %v309_v14  ;;  %v311_v21 = vsel %vm310_vm2, %v305_v15, %v307_v19  ;;  %v183_v14 = vand.u32 15, %v171_v9 }
  0x9c   : > { %1985 = vmatprep.subr.msk.mxu1 %vm225_vm0, %v312_v20 }
  0x9d   : > { %1986 = vmatpush1.msk.msra.mxu1 %vm225_vm0, %v311_v21  ;;  %vm197_vm11 = vcmp.ne.s32.totalorder %v183_v14, 0  ;;  %v2346_v21 = vsel %vm196_vm10, 1.0, %v2155_v0  ;;  %vm203_vm13 = vcmp.ne.s32.totalorder %v183_v14, 15 }
  0x9e   : > { %v401_v23 = vpop.permute.xlu1 %400  ;;  %v498_v24 = vpop.permute.xlu0 %497  ;;  %1987 = vmatmul.mubr.msk.f32.vlgmr.msra.gmra.mxu1 %vm221_vm1, %v1980_v22 }
  0x9f   : > { %v405_v25 = vsel %vm404_vm3, %v399_v17, %v401_v23  ;;  %v406_v26 = vsel %vm404_vm3, %v401_v23, %v403_v13  ;;  %v502_v27 = vsel %vm501_vm4, %v496_v16, %v498_v24  ;;  %v503_v28 = vsel %vm501_vm4, %v498_v24, %v500_v18  ;;  %575 = vmatprep.mubr.f32.mxu1 %v2155_v0 }
  0xa0   : > { %1989 = vmatprep.subr.msk.mxu0 %vm225_vm0, %v406_v26  ;;  %1993 = vmatprep.subr.msk.mxu1 %vm225_vm0, %v503_v28  ;;  %v2349_v24 = vsel %vm197_vm11, 1.0, %v2155_v0 }
  0xa1   : > { %1990 = vmatpush1.msk.msra.mxu0 %vm225_vm0, %v405_v25  ;;  %1994 = vmatpush1.msk.msra.mxu1 %vm225_vm0, %v502_v27 }
  0xa2   : > { %v585_v31 = vpop.permute.xlu1 %584  ;;  %v587_v32 = vpop.permute.xlu0 %586  ;;  %1991 = vmatmul.mubr.msk.f32.vlgmr.msra.gmra.mxu0 %vm221_vm1, %v1988_v29  ;;  %1995 = vmatmul.mubr.msk.f32.vlgmr.msra.gmra.mxu1 %vm221_vm1, %v1992_v30  ;;  %v2353_v30 = vsel %vm202_vm12, 1.0, %v2155_v0 }
  0xa3   : > { %v590_v33 = vsel %vm588_vm5, %v585_v31, %v587_v32  ;;  %662 = vmatprep.mubr.f32.mxu0 %v2155_v0  ;;  %756 = vmatprep.mubr.f32.mxu1 %v2155_v0 }
  0xa4   : > { %1996 = vmatprep.subr.msk.mxu0 %vm225_vm0, %v590_v33 }
  0xa6   : > { %v583_v34 = vpop.permute.xlu1 %582  ;;  %v679_v35 = vpop.permute.xlu0 %678 }
  0xa7   : > { %v589_v37 = vsel %vm588_vm5, %v583_v34, %v585_v31 }
  0xa8   : > { %1997 = vmatpush1.msk.msra.mxu0 %vm225_vm0, %v589_v37 }
  0xa9   : > { %1998 = vmatmul.mubr.msk.f32.vlgmr.msra.gmra.mxu0 %vm221_vm1, %v487_v36  ;;  %v2357_v36 = vsel %vm203_vm13, 1.0, %v2155_v0 }
  0xaa   : > { %v681_v38 = vpop.permute.xlu1 %680  ;;  %v677_v39 = vpop.permute.xlu0 %676  ;;  %860 = vmatprep.mubr.f32.mxu0 %v2155_v0 }
  0xab   : > { %v684_v40 = vsel %vm682_vm6, %v679_v35, %v681_v38  ;;  %v683_v41 = vsel %vm682_vm6, %v677_v39, %v679_v35 }
  0xac   : > { %2000 = vmatprep.subr.msk.mxu1 %vm225_vm0, %v684_v40 }
  0xad   : > { %2001 = vmatpush1.msk.msra.mxu1 %vm225_vm0, %v683_v41 }
  0xae   : > { %v783_v43 = vpop.permute.xlu1 %782  ;;  %v785_v44 = vpop.permute.xlu0 %784  ;;  %2002 = vmatmul.mubr.msk.f32.vlgmr.msra.gmra.mxu1 %vm221_vm1, %v1999_v42 }
  0xaf   : > { %v788_v45 = vsel %vm786_vm7, %v783_v43, %v785_v44  ;;  %950 = vmatprep.mubr.f32.mxu1 %v2155_v0 }
  0xb0   : > { %2005 = vmatprep.subr.msk.mxu0 %vm225_vm0, %v788_v45 }
  0xb2   : > { %v781_v46 = vpop.permute.xlu1 %780  ;;  %v873_v47 = vpop.permute.xlu0 %872 }
  0xb3   : > { %v787_v49 = vsel %vm786_vm7, %v781_v46, %v783_v43 }
  0xb4   : > { %2006 = vmatpush1.msk.msra.mxu0 %vm225_vm0, %v787_v49 }
  0xb5   : > { %2007 = vmatmul.mubr.msk.f32.vlgmr.msra.gmra.mxu0 %vm221_vm1, %v2004_v48 }
  0xb6   : > { %v875_v50 = vpop.permute.xlu1 %874  ;;  %v871_v51 = vpop.permute.xlu0 %870  ;;  %1044 = vmatprep.mubr.f32.mxu0 %v2155_v0 }
  0xb7   : > { %v878_v52 = vsel %vm876_vm8, %v873_v47, %v875_v50  ;;  %v877_v53 = vsel %vm876_vm8, %v871_v51, %v873_v47 }
  0xb8   : > { %2008 = vmatprep.subr.msk.mxu1 %vm225_vm0, %v878_v52 }
  0xb9   : > { %2009 = vmatpush1.msk.msra.mxu1 %vm225_vm0, %v877_v53 }
  0xba   : > { %v967_v55 = vpop.permute.xlu1 %966  ;;  %v969_v56 = vpop.permute.xlu0 %968  ;;  %2010 = vmatmul.mubr.msk.f32.vlgmr.msra.gmra.mxu1 %vm221_vm1, %v2003_v54 }
  0xbb   : > { %v972_v57 = vsel %vm970_vm9, %v967_v55, %v969_v56  ;;  %1157 = vmatprep.mubr.f32.mxu1 %v2155_v0 }
  0xbc   : > { %2012 = vmatprep.subr.msk.mxu0 %vm225_vm0, %v972_v57 }
  0xbe   : > { %v965_v58 = vpop.permute.xlu1 %964 }
  0xbf   : > { %v971_v60 = vsel %vm970_vm9, %v965_v58, %v967_v55 }
  0xc0   : > { %2013 = vmatpush1.msk.msra.mxu0 %vm225_vm0, %v971_v60 }
  0xc1   : > { %2014 = vmatmul.mubr.msk.f32.vlgmr.msra.gmra.mxu0 %vm221_vm1, %v2011_v59 }
  0xc2   : > { %1244 = vmatprep.mubr.f32.mxu0 %v2155_v0 }
  0xdc   : > { %v296_v61 = vpop.f32.mrf.mxu0 }
  0xde   : > { %v298_v63 = vpop.f32.mrf.mxu0 }
 0x15e   : > { %v386_v62 = vpop.f32.mrf.mxu1 }
 0x15f   : > { %v387_v19 = vadd.f32 %v386_v62, %v296_v61 }
 0x160   : > { %v388_v1 = vpop.f32.mrf.mxu1 }
 0x161   : > { %v389_v22 = vadd.f32 %v388_v1, %v298_v63  ;;  %v2016_v1 = vld [vmem:[%s2498_s2 + $0x20] sm:$0xff] }
 0x162   : > { %v480_v2 = vpop.f32.mrf.mxu0  ;;  %v577_v4 = vpop.f32.mrf.mxu1 }
 0x163   : > { %v485_v27 = vadd.f32 %v480_v2, %v387_v19 }
 0x164   : > { %v482_v5 = vpop.f32.mrf.mxu0  ;;  %v579_v7 = vpop.f32.mrf.mxu1 }
 0x165   : > { %v486_v32 = vadd.f32 %v482_v5, %v389_v22 }
 0x169   : > { %v664_v8 = vpop.f32.mrf.mxu0 }
 0x16a   : > { %v665_v13 = vadd.f32 %v664_v8, %v577_v4 }
 0x16b   : > { %v666_v12 = vpop.f32.mrf.mxu0 }
 0x16c   : > { %v667_v16 = vadd.f32 %v666_v12, %v579_v7 }
 0x16e   : > { %v758_v10 = vpop.f32.mrf.mxu1 }
 0x16f   : > { %v763_v20 = vadd.f32 %v758_v10, %v665_v13  ;;  %v2015_v13 = vld [vmem:[%s2498_s2 + $0x8] sm:$0xff] }
 0x170   : > { %v760_v15 = vpop.f32.mrf.mxu1 }
 0x171   : > { %v764_v23 = vadd.f32 %v760_v15, %v667_v16  ;;  %v765_v28 = vmul.f32 %v2346_v21, %v763_v20 }
 0x173   : > { %v766_v33 = vmul.f32 %v2349_v24, %v764_v23  ;;  %v767_v38 = vadd.f32 %v765_v28, %v485_v27 }
 0x175   : > { %v862_v17 = vpop.f32.mrf.mxu0  ;;  %v768_v41 = vadd.f32 %v766_v33, %v486_v32 }
 0x177   : > { %v864_v25 = vpop.f32.mrf.mxu0 }
 0x17a   : > { %v952_v18 = vpop.f32.mrf.mxu1 }
 0x17b   : > { %v953_v29 = vadd.f32 %v952_v18, %v862_v17  ;;  %v2019_v18 = vld [vmem:[%s2498_s2 + $0x38] sm:$0xff] }
 0x17c   : > { %v954_v26 = vpop.f32.mrf.mxu1 }
 0x17d   : > { %v955_v34 = vadd.f32 %v954_v26, %v864_v25  ;;  %v2021_v26 = vld [vmem:[%s2498_s2 + $0x18] sm:$0xff] }
 0x181   : > { %v1046_v31 = vpop.f32.mrf.mxu0 }
 0x182   : > { %v1051_v35 = vadd.f32 %v1046_v31, %v953_v29 }
 0x183   : > { %v1048_v37 = vpop.f32.mrf.mxu0 }
 0x184   : > { %v1053_v39 = vmul.f32 %v2353_v30, %v1051_v35  ;;  %v1052_v40 = vadd.f32 %v1048_v37, %v955_v34  ;;  %v1345_v34 = vld [vmem:[%s2498_s2] sm:$0xff]  ;;  %v2024_v35 = vld [vmem:[%s2498_s2 + $0x30] sm:$0xff] }
 0x186   : > { %v1055_v42 = vadd.f32 %v1053_v39, %v767_v38  ;;  %v1054_v43 = vmul.f32 %v2357_v36, %v1052_v40 }
 0x188   : > { %v1056_v44 = vadd.f32 %v1054_v43, %v768_v41  ;;  %v1061_v46 = vmul.f32 %v1055_v42, %v1055_v42  ;;  %v2027_v41 = vld [vmem:[%s2498_s2 + $0x28] sm:$0xff] }
 0x18a   : > { %v1057_v45 = vadd.f32 %v1056_v44, %v1055_v42  ;;  %v1062_v47 = vmul.f32 %v1056_v44, %v1056_v44 }
 0x18c   : > { %1058 = vadd.xlane.f32.xlu0 %v1057_v45  ;;  %v1063_v48 = vadd.f32 %v1062_v47, %v1061_v46  ;;  %v2026_v46 = vld [vmem:[%s2498_s2 + $0x10] sm:$0xff] }
 0x18e   : > { %1064 = vadd.xlane.f32.xlu1 %v1063_v48 }
 0x19f   : > { %1432 = vrot.lane.b32.xlu1 %v2155_v0, %s2159_s7 }
 0x1a2   : > { %1167 = vrot.lane.b32.xlu0 %v2155_v0, %s2157_s30 }
 0x1a3   : > { %1522 = vrot.lane.b32.xlu1 %v2155_v0, %s2160_s8 }
 0x1a6   : > { %1263 = vrot.lane.b32.xlu0 %v2155_v0, %s2156_s29 }
 0x1aa   : > { %1348 = vrot.lane.b32.xlu0 %v2155_v0, %s2158_s6 }
 0x1ae   : > { %1616 = vrot.lane.b32.xlu0 %v2155_v0, %s2161_s9 }
 0x1b2   : > { %1696 = vrot.lane.b32.xlu0 %v2155_v0, %s2162_s10 }
 0x215   : > { %v1059_v49 = vpop.xlane.xlu0 %1058 }
 0x216   : > { %v1060_v50 = vmul.f32 0.00390625, %v1059_v49 }
 0x217   : > { %v1065_v51 = vpop.xlane.xlu1 %1064 }
 0x218   : > { %v1066_v52 = vmul.f32 0.00390625, %v1065_v51  ;;  %v1067_v53 = vmul.f32 %v1060_v50, %v1060_v50  ;;  %v1070_v57 = vsub.f32 %v1055_v42, %v1060_v50  ;;  %v1071_v58 = vsub.f32 %v1056_v44, %v1060_v50 }
 0x219   : > { %v1168_v2 = vpop.permute.xlu0 %1167 }
 0x21a   : > { %v1068_v54 = vsub.f32 %v1066_v52, %v1067_v53 }
 0x21b   : > { %v1433_v5 = vpop.permute.xlu1 %1432 }
 0x21c   : > { %v1069_v55 = vmax.f32 %v1068_v54, 0.0 }
 0x21d   : > { %v1264_v3 = vpop.permute.xlu0 %1263 }
 0x21e   : > { %v1072_v56 = vadd.f32 1e-05, %v1069_v55 }
 0x21f   : > { %v1523_v7 = vpop.permute.xlu1 %1522 }
 0x220   : > { %2089 = vrsqrt.f32 %v1072_v56 }
 0x221   : > { %v1349_v4 = vpop.permute.xlu0 %1348 }
 0x225   : > { %v1617_v6 = vpop.permute.xlu0 %1616 }
 0x229   : > { %v1697_v8 = vpop.permute.xlu0 %1696 }
 0x22d   : > { %v2090_v59 = vpop.eup %2089 }
 0x22e   : > { %v1074_v60 = vmul.f32 %v2090_v59, %v1070_v57  ;;  %v1075_v61 = vmul.f32 %v2090_v59, %v1071_v58 }
 0x230   : > { %v1076_v62 = vmax.f32 %v1074_v60, 0.0  ;;  %v1077_v63 = vmax.f32 %v1075_v61, 0.0 }
 0x232   : > { %1171 = vrot.lane.b32.xlu1 %v1077_v63, %s2157_s30  ;;  %1123 = vmatprep.subr.mxu1 %v1077_v63 }
 0x233   : > { %1169 = vrot.lane.b32.xlu0 %v1076_v62, %s2157_s30  ;;  %1124 = vmatpush1.msra.mxu1 %v1076_v62  ;;  %s163_s30 = scalar_lea.vmem [#allocation4], %s1973_s28 }
 0x234   : > { %2017 = vmatmul.mubr.msk.f32.vlgmr.msra.gmra.mxu1 %vm1089_vm14, %v2016_v1 }
 0x235   : > { %1336 = vmatprep.mubr.f32.mxu1 %v2155_v0 }
 0x236   : > { %1261 = vrot.lane.b32.xlu1 %v1077_v63, %s2156_s29 }
 0x237   : > { %1350 = vrot.lane.b32.xlu0 %v1076_v62, %s2158_s6 }
 0x23a   : > { %1259 = vrot.lane.b32.xlu1 %v1076_v62, %s2156_s29  ;;  %s2038_s29 = sshll.u32 %s2206_s16, 8  ;;  %s2164_s16 = smov [#allocation4]  }
 0x23b   : > { %1436 = vrot.lane.b32.xlu0 %v1077_v63, %s2159_s7  ;;  %s2097_s4 = sshll.u32 %s2164_s16, 4  ;;  %s2098_s4 = int_to_ptr.vmem [resolvable:$false] %s2097_s4 }
 0x23c   : > { %s2099_s5 = scalar_lea.vmem %s2098_s4, 512 }
 0x23e   : > { %1352 = vrot.lane.b32.xlu1 %v1077_v63, %s2158_s6  ;;  %s1910_s6 = sshll.u32 %s163_s30, 4  ;;  %s1911_s6 = int_to_ptr.vmem [resolvable:$true] %s1910_s6 }
 0x23f   : > { %1520 = vrot.lane.b32.xlu0 %v1077_v63, %s2160_s8  ;;  %p2100_p0 = scmp.lt.s32.totalorder %s1911_s6, %s2098_s4 }
 0x242   : > { %1434 = vrot.lane.b32.xlu1 %v1076_v62, %s2159_s7 }
 0x243   : > { %1518 = vrot.lane.b32.xlu0 %v1076_v62, %s2160_s8 }
 0x246   : > { %1614 = vrot.lane.b32.xlu1 %v1077_v63, %s2161_s9 }
 0x247   : > { %1698 = vrot.lane.b32.xlu0 %v1076_v62, %s2162_s10 }
 0x24a   : > { %1612 = vrot.lane.b32.xlu1 %v1076_v62, %s2161_s9  ;;  %s2461_s9 = scalar_lea.hbm %s2499_s3, %s2038_s29 }
 0x24b   : > { %1786 = vrot.lane.b32.xlu0 %v2155_v0, %s2163_s11 }
 0x24e   : > { %1700 = vrot.lane.b32.xlu1 %v1077_v63, %s2162_s10  ;;  %s1896_s10 = scalar_lea.sflag [#allocation5], %s161_s27 }
 0x252   : > { %1784 = vrot.lane.b32.xlu1 %v1077_v63, %s2163_s11 }
 0x256   : > { %1782 = vrot.lane.b32.xlu1 %v1076_v62, %s2163_s11  ;;  %s2093_s11 = scalar_lea.vmem %s1911_s6, 256 }
 0x257   : > { %p2094_p11 = scmp.ne.s32.totalorder %s1911_s6, %s2093_s11  ;;  %p2101_p1 = scmp.lt.s32.totalorder %s2099_s5, %s2093_s11 }
 0x259   : > { %p2095_p12 = pnand %p2094_p11, %p2223_p5  ;;  %p2102_p2 = por %p2101_p1, %p2100_p0 }
 0x25b   : > { %p2096_p13 = pneg %p2095_p12 }
 0x25d   : > { %p2103_p3 = pnand %p2102_p2, %p2096_p13 }
 0x2a4   : > { %v1172_v9 = vpop.permute.xlu1 %1171 }
 0x2a5   : > { %v1170_v10 = vpop.permute.xlu0 %1169 }
 0x2a6   : > { %v1173_v11 = vsel %vm310_vm2, %v1168_v2, %v1170_v10  ;;  %v1174_v12 = vsel %vm310_vm2, %v1170_v10, %v1172_v9 }
 0x2a7   : > { %1210 = vmatprep.subr.mxu0 %v1174_v12 }
 0x2a8   : > { %1211 = vmatpush1.msra.mxu0 %v1173_v11  ;;  %v1262_v14 = vpop.permute.xlu1 %1261 }
 0x2a9   : > { %v1351_v15 = vpop.permute.xlu0 %1350  ;;  %v1266_v16 = vsel %vm404_vm3, %v1262_v14, %v1264_v3  ;;  %2018 = vmatmul.mubr.msk.f32.vlgmr.msra.gmra.mxu0 %vm1089_vm14, %v2015_v13 }
 0x2aa   : > { %1302 = vmatprep.subr.mxu1 %v1266_v16  ;;  %1425 = vmatprep.mubr.f32.mxu0 %v2155_v0  ;;  %v1354_v27 = vsel %vm501_vm4, %v1349_v4, %v1351_v15 }
 0x2ac   : > { %v1260_v17 = vpop.permute.xlu1 %1259 }
 0x2ad   : > { %v1265_v19 = vsel %vm404_vm3, %v1260_v17, %v1262_v14  ;;  %v1437_v20 = vpop.permute.xlu0 %1436 }
 0x2ae   : > { %1303 = vmatpush1.msra.mxu1 %v1265_v19 }
 0x2af   : > { %2020 = vmatmul.mubr.msk.f32.vlgmr.msra.gmra.mxu1 %vm1089_vm14, %v2019_v18 }
 0x2b0   : > { %v1353_v22 = vpop.permute.xlu1 %1352  ;;  %1509 = vmatprep.mubr.f32.mxu1 %v2155_v0 }
 0x2b1   : > { %v1521_v23 = vpop.permute.xlu0 %1520  ;;  %v1355_v25 = vsel %vm501_vm4, %v1351_v15, %v1353_v22 }
 0x2b2   : > { %1391 = vmatprep.subr.mxu0 %v1355_v25  ;;  %v1525_v28 = vsel %vm682_vm6, %v1521_v23, %v1523_v7 }
 0x2b3   : > { %1392 = vmatpush1.msra.mxu0 %v1354_v27 }
 0x2b4   : > { %v1435_v29 = vpop.permute.xlu1 %1434  ;;  %1561 = vmatprep.subr.mxu0 %v1525_v28  ;;  %2022 = vmatmul.mubr.msk.f32.vlgmr.msra.gmra.mxu0 %vm1089_vm14, %v2021_v26 }
 0x2b5   : > { %v1438_v31 = vsel %vm588_vm5, %v1433_v5, %v1435_v29  ;;  %v1519_v32 = vpop.permute.xlu0 %1518  ;;  %v1439_v33 = vsel %vm588_vm5, %v1435_v29, %v1437_v20  ;;  %1595 = vmatprep.mubr.f32.mxu0 %v2155_v0 }
 0x2b6   : > { %v1524_v37 = vsel %vm682_vm6, %v1519_v32, %v1521_v23  ;;  %1475 = vmatprep.subr.mxu1 %v1439_v33 }
 0x2b7   : > { %1562 = vmatpush1.msra.mxu0 %v1524_v37  ;;  %1476 = vmatpush1.msra.mxu1 %v1438_v31 }
 0x2b8   : > { %v1615_v38 = vpop.permute.xlu1 %1614  ;;  %2023 = vmatmul.mubr.msk.f32.vlgmr.msra.gmra.mxu1 %vm1089_vm14, %v1345_v34  ;;  %2025 = vmatmul.mubr.msk.f32.vlgmr.msra.gmra.mxu0 %vm1089_vm14, %v2024_v35 }
 0x2b9   : > { %v1619_v39 = vsel %vm786_vm7, %v1615_v38, %v1617_v6  ;;  %1689 = vmatprep.mubr.f32.mxu1 %v2155_v0  ;;  %1773 = vmatprep.mubr.f32.mxu0 %v2155_v0  ;;  %v1699_v43 = vpop.permute.xlu0 %1698 }
 0x2ba   : > { %1655 = vmatprep.subr.mxu1 %v1619_v39  ;;  %v1702_v47 = vsel %vm876_vm8, %v1697_v8, %v1699_v43 }
 0x2bc   : > { %v1613_v40 = vpop.permute.xlu1 %1612 }
 0x2bd   : > { %v1618_v42 = vsel %vm786_vm7, %v1613_v40, %v1615_v38  ;;  %v1787_v48 = vpop.permute.xlu0 %1786 }
 0x2be   : > { %1656 = vmatpush1.msra.mxu1 %v1618_v42 }
 0x2bf   : > { %2028 = vmatmul.mubr.msk.f32.vlgmr.msra.gmra.mxu1 %vm1089_vm14, %v2027_v41 }
 0x2c0   : > { %v1701_v44 = vpop.permute.xlu1 %1700  ;;  %1859 = vmatprep.mubr.f32.mxu1 %v2155_v0  ;;  %v2030_v0 = vld [vmem:[%s2498_s2 + $0x40] sm:$0xff] }
 0x2c1   : > { %v1703_v45 = vsel %vm876_vm8, %v1699_v43, %v1701_v44 }
 0x2c2   : > { %1739 = vmatprep.subr.mxu0 %v1703_v45 }
 0x2c3   : > { %1740 = vmatpush1.msra.mxu0 %v1702_v47 }
 0x2c4   : > { %v1785_v49 = vpop.permute.xlu1 %1784  ;;  %2029 = vmatmul.mubr.msk.f32.vlgmr.msra.gmra.mxu0 %vm1089_vm14, %v2026_v46 }
 0x2c5   : > { %v1789_v50 = vsel %vm970_vm9, %v1785_v49, %v1787_v48 }
 0x2c6   : > { %1825 = vmatprep.subr.mxu1 %v1789_v50 }
 0x2c8   : > { %v1783_v51 = vpop.permute.xlu1 %1782 }
 0x2c9   : > { %v1788_v52 = vsel %vm970_vm9, %v1783_v51, %v1785_v49 }
 0x2ca   : > { %1826 = vmatpush1.msra.mxu1 %v1788_v52 }
 0x2cb   : > { %2031 = vmatmul.mubr.msk.f32.vlgmr.msra.gmra.mxu1 %vm1089_vm14, %v2030_v0 }
 0x2f4   : > { %v1159_v53 = vpop.f32.mrf.mxu1 }
 0x2f6   : > { %v1161_v55 = vpop.f32.mrf.mxu1 }
 0x369   : > { %v1246_v54 = vpop.f32.mrf.mxu0 }
 0x36a   : > { %v1247_v6 = vadd.f32 %v1246_v54, %v1159_v53 }
 0x36b   : > { %v1248_v56 = vpop.f32.mrf.mxu0 }
 0x36c   : > { %v1249_v8 = vadd.f32 %v1248_v56, %v1161_v55 }
 0x36f   : > { %v1338_v57 = vpop.f32.mrf.mxu1 }
 0x370   : > { %v1343_v12 = vadd.f32 %v1338_v57, %v1247_v6 }
 0x371   : > { %v1340_v59 = vpop.f32.mrf.mxu1 }
 0x372   : > { %v1344_v16 = vadd.f32 %v1340_v59, %v1249_v8 }
 0x374   : > { %v1427_v58 = vpop.f32.mrf.mxu0 }
 0x376   : > { %v1429_v60 = vpop.f32.mrf.mxu0 }
 0x378   : > { %v1511_v61 = vpop.f32.mrf.mxu1  ;;  %v1597_v62 = vpop.f32.mrf.mxu0 }
 0x379   : > { %v1512_v1 = vadd.f32 %v1511_v61, %v1427_v58 }
 0x37a   : > { %v1513_v63 = vpop.f32.mrf.mxu1  ;;  %v1599_v2 = vpop.f32.mrf.mxu0 }
 0x37b   : > { %v1514_v3 = vadd.f32 %v1513_v63, %v1429_v60  ;;  %v1602_v7 = vadd.f32 %v1597_v62, %v1512_v1 }
 0x37d   : > { %v1603_v9 = vadd.f32 %v1599_v2, %v1514_v3  ;;  %v1604_v13 = vmul.f32 %v2346_v21, %v1602_v7 }
 0x37f   : > { %v1691_v4 = vpop.f32.mrf.mxu1  ;;  %v1605_v17 = vmul.f32 %v2349_v24, %v1603_v9  ;;  %v1606_v22 = vadd.f32 %v1604_v13, %v1343_v12 }
 0x381   : > { %v1693_v10 = vpop.f32.mrf.mxu1  ;;  %v1607_v26 = vadd.f32 %v1605_v17, %v1344_v16 }
 0x384   : > { %v1775_v5 = vpop.f32.mrf.mxu0 }
 0x385   : > { %v1776_v14 = vadd.f32 %v1775_v5, %v1691_v4 }
 0x386   : > { %v1777_v11 = vpop.f32.mrf.mxu0 }
 0x387   : > { %v1778_v18 = vadd.f32 %v1777_v11, %v1693_v10 }
 0x38b   : > { %v1861_v15 = vpop.f32.mrf.mxu1 }
 0x38c   : > { %v1866_v19 = vadd.f32 %v1861_v15, %v1776_v14 }
 0x38d   : > { %v1863_v20 = vpop.f32.mrf.mxu1 }
 0x38e   : > { %v1868_v23 = vmul.f32 %v2353_v30, %v1866_v19  ;;  %v1867_v25 = vadd.f32 %v1863_v20, %v1778_v18 }
 0x390   : > { %v1870_v27 = vadd.f32 %v1868_v23, %v1606_v22  ;;  %v1869_v28 = vmul.f32 %v2357_v36, %v1867_v25 }
 0x392   : > { %v1871_v29 = vadd.f32 %v1869_v28, %v1607_v26  ;;  %v1876_v21 = vmul.f32 %v1870_v27, %v1870_v27 }
 0x394   : > { %v1872_v31 = vadd.f32 %v1871_v29, %v1870_v27  ;;  %v1877_v32 = vmul.f32 %v1871_v29, %v1871_v29 }
 0x396   : > { %1873 = vadd.xlane.f32.xlu0 %v1872_v31  ;;  %v1878_v33 = vadd.f32 %v1877_v32, %v1876_v21 }
 0x398   : > { %1879 = vadd.xlane.f32.xlu1 %v1878_v33 }
 0x41f   : > { %v1874_v24 = vpop.xlane.xlu0 %1873 }
 0x420   : > { %v1875_v34 = vmul.f32 0.00390625, %v1874_v24 }
 0x421   : > { %v1880_v35 = vpop.xlane.xlu1 %1879 }
 0x422   : > { %v1881_v37 = vmul.f32 0.00390625, %v1880_v35  ;;  %v1882_v38 = vmul.f32 %v1875_v34, %v1875_v34  ;;  %v1885_v36 = vsub.f32 %v1870_v27, %v1875_v34  ;;  %v1886_v41 = vsub.f32 %v1871_v29, %v1875_v34 }
 0x424   : > { %v1883_v30 = vsub.f32 %v1881_v37, %v1882_v38 }
 0x426   : > { %v1884_v39 = vmax.f32 %v1883_v30, 0.0 }
 0x428   : > { %v1887_v40 = vadd.f32 1e-05, %v1884_v39 }
 0x42a   : > { %2091 = vrsqrt.f32 %v1887_v40 }
 0x437   : > { %v2092_v42 = vpop.eup %2091 }
 0x438   : > { %v1889_v43 = vmul.f32 %v2092_v42, %v1885_v36  ;;  %v1890_v44 = vmul.f32 %v2092_v42, %v1886_v41 }
 0x43a   : > { %v1891_v45 = vmax.f32 %v1889_v43, 0.0  ;;  %v1892_v46 = vmax.f32 %v1890_v44, 0.0 }
 0x43c   : > { %1893 = vst [vmem:[%s163_s30] sm:$0xff] %v1891_v45  ;;  %1894 = vst [vmem:[%s163_s30 + $0x8] sm:$0xff] %v1892_v46 }
 0x43d   : > { %2106 = shalt.err (!%p2103_p3)
}
 0x43e   : > { %s2107_s17 = scalar_lea.hbm %s2461_s9, 256  ;;  %s2111_s24 = scalar_lea.hbm %s2499_s3, 512 }
 0x43f   : > { %p2108_p4 = scmp.ne.s32.totalorder %s2461_s9, %s2107_s17  ;;  %p2112_p9 = scmp.lt.s32.totalorder %s2461_s9, %s2499_s3 }
 0x440   : > { %p2113_p10 = scmp.lt.s32.totalorder %s2111_s24, %s2107_s17 }
 0x441   : > { %p2109_p7 = pnand %p2108_p4, %p2223_p5 }
 0x442   : > { %p2114_p11 = por %p2113_p10, %p2112_p9 }
 0x443   : > { %p2110_p8 = pneg %p2109_p7 }
 0x445   : > { %p2115_p12 = pnand %p2114_p11, %p2110_p8 }
 0x447   : > { %2118 = shalt.err (!%p2115_p12)
}
 0x448   : > { %2039 = dma.vmem_to_hbm [thread:$0]  (%p2223_p5), %s1911_s6, 256, %s2461_s9, %s1896_s10  }
 0x449 PF: > { %p2045_p13 = scmp.ge.s32.totalorder %s2153_s15, 2  ;;  %s1922_s27 = sand.u32 1, %s2141_s12  }
 0x44a   : > { %s1923_s28 = scalar_lea.sflag [#allocation5], %s1922_s27 }
 0x44b   : > { %p2042_p0 = pnand %p2045_p13, %p2227_p6 }
 0x44d   : > { %p2043_p1 = pneg %p2042_p0 }
 0x44f   : > { %2136 = dma.done.wait (%p2043_p1), %s1923_s28, 256  }
 0x450   : > { %2138 = vsyncadd (%p2043_p1), %s1923_s28, 4294967040  ;;  %p13_p2 = scmp.ge.s32.totalorder %s2210_s18, 4   ;;  %s2502_s12 = smov %s2145_s13 }
 0x451   : > { %s2503_s13 = smov %s2149_s14  ;;  %s2504_s14 = smov %s2221_s21 }
 0x452   : > { %s2505_s15 = smov %s2210_s18  ;;  %15 = sbr.rel (!%p13_p2) target bundleno = 3 (0x3), region = 83 }
 0x457   :  { %1928 = vsyncpa [#allocation5], 1 }
 0x458   :  { %1930 = vsyncpa [#allocation5 + $0x1], 1 }

</bundles_post_ra>
